<compile_context>
chip_gen: v7x
topology: tpu7x:2x2x1
jax: 0.10.0
libtpu: 0.0.40
codegen_flags: <defaults>
</compile_context>

<pallas_src>
import functools

import jax
import jax.numpy as jnp
from jax.experimental import pallas as pl
from jax.experimental.pallas import tpu as pltpu


def _causal_conv1d_kernel(x_ref, cache_ref, w_ref, b_ref, y_ref,
                          *, temporal_width: int):
    """One (batch-tile, channel-tile) block per grid step; full time extent."""
    tw = temporal_width
    T = x_ref.shape[1]

    x = x_ref[...].astype(jnp.float32)        # (Bt, T, Ct)
    c = cache_ref[...].astype(jnp.float32)    # (Bt, tw-1, Ct)
    w = w_ref[...].astype(jnp.float32)        # (tw, Ct)
    bias = b_ref[...].astype(jnp.float32)     # (1, Ct)

    # Last tap (k = tw-1) reads x directly (no shifted slice); start from bias.
    acc = bias[None, :, :] + w[tw - 1][None, None, :] * x      # (Bt, T, Ct)

    # Causally padded sequence, assembled once in VMEM (never touches HBM).
    xf = jnp.concatenate([c, x], axis=1)                       # (Bt, T+tw-1, Ct)
    for k in range(tw - 1):                                    # tiny static unroll
        acc = acc + w[k][None, None, :] * xf[:, k:k + T, :]

    y_ref[...] = acc.astype(y_ref.dtype)


def _pick_tiles(B, T, C, itemsize, budget_bytes=2 << 20):
    """Choose (batch_tile, channel_tile) that divide B / C."""
    # Channel tile: lane-dense (multiple of 128) and bounded, so per-block VMEM
    # is independent of model width (important under v7x's 64 MiB VMEM).
    if C % 128 == 0 and C > 512:
        c_tile = next((c for c in (512, 384, 256, 128) if C % c == 0), C)
    else:
        c_tile = C
    n_c = C // c_tile

    # Batch tile: grow the per-step block to amortize fixed pipeline overhead,
    # capped at ~budget_bytes for the x block.
    per_batch = max(1, T * c_tile * itemsize)
    max_bt = max(1, int(budget_bytes // per_batch))
    b_tile = max(d for d in range(1, B + 1) if B % d == 0 and d <= max_bt)
    # Keep >= 2 parallel grid steps whenever possible so both v7x TCs get work.
    if B >= 2 and (B // b_tile) * n_c < 2:
        b_tile = max(d for d in range(1, B) if B % d == 0 and B // d >= 2)
    return b_tile, c_tile


def causal_conv1d(x, cache, w, b):
    """x: [B, T, C], cache: [B, tw-1, C], w: [tw, C], b: [C] -> (y, new_cache)."""
    B, T, C = x.shape
    tw = w.shape[0]
    assert cache.shape == (B, tw - 1, C)
    assert w.shape == (tw, C) and b.shape == (C,)

    if tw == 1:  # degenerate case: pointwise scale + bias, no cache.
        y = (x.astype(jnp.float32) * w[0][None, None, :]
             + b[None, None, :]).astype(x.dtype)
        return y, x[:, T:, :]

    b_tile, c_tile = _pick_tiles(B, T, C, jnp.dtype(x.dtype).itemsize)
    n_b, n_c = B // b_tile, C // c_tile
    b2d = b.reshape(1, C)

    kernel = functools.partial(_causal_conv1d_kernel, temporal_width=tw)

    y = pl.pallas_call(
        kernel,
        out_shape=jax.ShapeDtypeStruct((B, T, C), x.dtype),
        grid_spec=pltpu.PrefetchScalarGridSpec(
            num_scalar_prefetch=0,
            grid=(n_b, n_c),
            in_specs=[
                pl.BlockSpec((b_tile, T, c_tile), lambda i, j: (i, 0, j)),       # x
                pl.BlockSpec((b_tile, tw - 1, c_tile), lambda i, j: (i, 0, j)),  # cache
                pl.BlockSpec((tw, c_tile), lambda i, j: (0, j)),                 # w
                pl.BlockSpec((1, c_tile), lambda i, j: (0, j)),                  # b
            ],
            out_specs=pl.BlockSpec((b_tile, T, c_tile), lambda i, j: (i, 0, j)),
        ),
        compiler_params=pltpu.CompilerParams(
            dimension_semantics=("parallel", "parallel"),
            vmem_limit_bytes=32 * 1024 * 1024,
        ),
    )(x, cache, w, b2d)

    # new_cache is pure data movement: produce it as a wrapper-side slice
    # (zero-cost for XLA) instead of a padded kernel output DMA stream.
    if T >= tw - 1:
        new_cache = x[:, T - (tw - 1):, :]
    else:
        new_cache = jnp.concatenate([cache, x], axis=1)[:, 1 - tw:, :]
    # TODO(synk): for very long T, additionally tile the time axis with a
    # (tw-1)-row halo instead of loading the full time extent per block.
    return y, new_cache


def _reference(x, cache, w, b):
    """Pure-JAX reference mirroring the PyTorch forward."""
    x_full = jnp.concatenate([cache, x], axis=1)
    T = x.shape[1]
    tw = w.shape[0]
    y = sum(x_full[:, k:k + T, :] * w[k][None, None, :] for k in range(tw))
    y = y + b[None, None, :]
    return y.astype(x.dtype), x_full[:, 1 - tw:, :]


if __name__ == "__main__":
    # Small, TPU-friendly shapes: batch=2, seq=8, width=128, temporal_width=4.
    B, T, C, TW = 2, 8, 128, 4
    w_init_variance_scale = 0.01

    key = jax.random.PRNGKey(0)
    kx, kc, kw = jax.random.split(key, 3)

    x = jax.random.normal(kx, (B, T, C), dtype=jnp.float32)
    cache = jax.random.normal(kc, (B, TW - 1, C), dtype=jnp.float32)

    # Deterministic parameter init (variance-scaled normal + zero bias).
    w_std = (w_init_variance_scale / TW) ** 0.5
    w = w_std * jax.random.normal(kw, (TW, C), dtype=jnp.float32)
    b = jnp.zeros((C,), dtype=jnp.float32)

    y, new_cache = causal_conv1d(x, cache, w, b)
    jax.block_until_ready((y, new_cache))

    y_ref, cache_ref = _reference(x, cache, w, b)
    assert y.shape == (B, T, C) and new_cache.shape == (B, TW - 1, C)
    assert jnp.allclose(y, y_ref, atol=1e-5, rtol=1e-5)
    assert jnp.allclose(new_cache, cache_ref, atol=1e-6, rtol=1e-6)

    print("KERNEL_OK")
</pallas_src>

<mosaic_0001>
module attributes {stable_mosaic.version = 11 : i64} {
  func.func @_causal_conv1d_kernel(%arg0: i32, %arg1: i32, %arg2: memref<1x8x128xf32, #tpu.memory_space<vmem>>, %arg3: memref<1x3x128xf32, #tpu.memory_space<vmem>>, %arg4: memref<4x128xf32, #tpu.memory_space<vmem>>, %arg5: memref<1x128xf32, #tpu.memory_space<vmem>>, %arg6: memref<1x8x128xf32, #tpu.memory_space<vmem>>) attributes {dimension_semantics = [#tpu.dimension_semantics<parallel>, #tpu.dimension_semantics<parallel>], iteration_bounds = array<i64: 2, 1>, scalar_prefetch = 0 : i64, scratch_operands = 0 : i64, tpu.core_type = #tpu.core_type<tc>, window_params = [{transform_indices = @transform_0, window_bounds = array<i64: 1, 8, 128>}, {transform_indices = @transform_1, window_bounds = array<i64: 1, 3, 128>}, {transform_indices = @transform_2, window_bounds = array<i64: 4, 128>}, {transform_indices = @transform_3, window_bounds = array<i64: 1, 128>}, {transform_indices = @transform_4, window_bounds = array<i64: 1, 8, 128>}]} {
    %c0 = arith.constant 0 : index
    %c0_0 = arith.constant 0 : index
    %c0_1 = arith.constant 0 : index
    %0 = vector.load %arg2[%c0, %c0_0, %c0_1] : memref<1x8x128xf32, #tpu.memory_space<vmem>>, vector<1x8x128xf32>
    %c0_2 = arith.constant 0 : index
    %c0_3 = arith.constant 0 : index
    %c0_4 = arith.constant 0 : index
    %1 = vector.load %arg3[%c0_2, %c0_3, %c0_4] : memref<1x3x128xf32, #tpu.memory_space<vmem>>, vector<1x3x128xf32>
    %c0_5 = arith.constant 0 : index
    %c0_6 = arith.constant 0 : index
    %2 = vector.load %arg4[%c0_5, %c0_6] : memref<4x128xf32, #tpu.memory_space<vmem>>, vector<4x128xf32>
    %c0_7 = arith.constant 0 : index
    %c0_8 = arith.constant 0 : index
    %3 = vector.load %arg5[%c0_7, %c0_8] : memref<1x128xf32, #tpu.memory_space<vmem>>, vector<1x128xf32>
    %4 = vector.shape_cast %3 : vector<1x128xf32> to vector<1x1x128xf32>
    %5 = vector.extract_strided_slice %2 {offsets = [3, 0], sizes = [1, 128], strides = [1, 1]} : vector<4x128xf32> to vector<1x128xf32>
    %6 = vector.shape_cast %5 : vector<1x128xf32> to vector<128xf32>
    %7 = vector.shape_cast %6 : vector<128xf32> to vector<1x1x128xf32>
    %8 = vector.broadcast %7 : vector<1x1x128xf32> to vector<1x8x128xf32>
    %9 = arith.mulf %8, %0 : vector<1x8x128xf32>
    %10 = vector.broadcast %4 : vector<1x1x128xf32> to vector<1x8x128xf32>
    %11 = arith.addf %10, %9 : vector<1x8x128xf32>
    %12 = tpu.concatenate %1, %0 in 1 : vector<1x3x128xf32>, vector<1x8x128xf32> -> vector<1x11x128xf32>
    %13 = vector.extract_strided_slice %2 {offsets = [0, 0], sizes = [1, 128], strides = [1, 1]} : vector<4x128xf32> to vector<1x128xf32>
    %14 = vector.shape_cast %13 : vector<1x128xf32> to vector<128xf32>
    %15 = vector.shape_cast %14 : vector<128xf32> to vector<1x1x128xf32>
    %16 = vector.extract_strided_slice %12 {offsets = [0, 0, 0], sizes = [1, 8, 128], strides = [1, 1, 1]} : vector<1x11x128xf32> to vector<1x8x128xf32>
    %17 = vector.broadcast %15 : vector<1x1x128xf32> to vector<1x8x128xf32>
    %18 = arith.mulf %17, %16 : vector<1x8x128xf32>
    %19 = arith.addf %11, %18 : vector<1x8x128xf32>
    %20 = vector.extract_strided_slice %2 {offsets = [1, 0], sizes = [1, 128], strides = [1, 1]} : vector<4x128xf32> to vector<1x128xf32>
    %21 = vector.shape_cast %20 : vector<1x128xf32> to vector<128xf32>
    %22 = vector.shape_cast %21 : vector<128xf32> to vector<1x1x128xf32>
    %23 = vector.extract_strided_slice %12 {offsets = [0, 1, 0], sizes = [1, 8, 128], strides = [1, 1, 1]} : vector<1x11x128xf32> to vector<1x8x128xf32>
    %24 = vector.broadcast %22 : vector<1x1x128xf32> to vector<1x8x128xf32>
    %25 = arith.mulf %24, %23 : vector<1x8x128xf32>
    %26 = arith.addf %19, %25 : vector<1x8x128xf32>
    %27 = vector.extract_strided_slice %2 {offsets = [2, 0], sizes = [1, 128], strides = [1, 1]} : vector<4x128xf32> to vector<1x128xf32>
    %28 = vector.shape_cast %27 : vector<1x128xf32> to vector<128xf32>
    %29 = vector.shape_cast %28 : vector<128xf32> to vector<1x1x128xf32>
    %30 = vector.extract_strided_slice %12 {offsets = [0, 2, 0], sizes = [1, 8, 128], strides = [1, 1, 1]} : vector<1x11x128xf32> to vector<1x8x128xf32>
    %31 = vector.broadcast %29 : vector<1x1x128xf32> to vector<1x8x128xf32>
    %32 = arith.mulf %31, %30 : vector<1x8x128xf32>
    %33 = arith.addf %26, %32 : vector<1x8x128xf32>
    %c0_9 = arith.constant 0 : index
    %c0_10 = arith.constant 0 : index
    %c0_11 = arith.constant 0 : index
    %34 = vector.load %arg6[%c0_9, %c0_10, %c0_11] : memref<1x8x128xf32, #tpu.memory_space<vmem>>, vector<1x8x128xf32>
    tpu.vector_store %arg6[%c0_9, %c0_10, %c0_11], %33 {strides = array<i32>} : memref<1x8x128xf32, #tpu.memory_space<vmem>>, vector<1x8x128xf32>,
    return
  }
  func.func @transform_0(%arg0: i32, %arg1: i32) -> (i32, i32, i32) {
    %c0_i32 = arith.constant 0 : i32
    %c0_i32_0 = arith.constant 0 : i32
    return %arg0, %c0_i32, %arg1 : i32, i32, i32
  }
  func.func @transform_1(%arg0: i32, %arg1: i32) -> (i32, i32, i32) {
    %c0_i32 = arith.constant 0 : i32
    %c0_i32_0 = arith.constant 0 : i32
    return %arg0, %c0_i32, %arg1 : i32, i32, i32
  }
  func.func @transform_2(%arg0: i32, %arg1: i32) -> (i32, i32) {
    %c0_i32 = arith.constant 0 : i32
    %c0_i32_0 = arith.constant 0 : i32
    return %c0_i32, %arg1 : i32, i32
  }
  func.func @transform_3(%arg0: i32, %arg1: i32) -> (i32, i32) {
    %c0_i32 = arith.constant 0 : i32
    %c0_i32_0 = arith.constant 0 : i32
    return %c0_i32, %arg1 : i32, i32
  }
  func.func @transform_4(%arg0: i32, %arg1: i32) -> (i32, i32, i32) {
    %c0_i32 = arith.constant 0 : i32
    %c0_i32_0 = arith.constant 0 : i32
    return %arg0, %c0_i32, %arg1 : i32, i32, i32
  }
}

</mosaic_0001>

<bundles_post_ra>
// kernel: tpu_custom_call.1
= control target key start
LH: loop header
LB: loop body
LE: loop exit
PB: predicated region body
PF: predicated region fallthrough
CT: control target
= control target key end

     0   :  { %9 = vsyncpa [#allocation3], 0  ;;  %s889_s0 = inlined_call_operand.hbm [shape: f32[2,8,128], index: 0, kind: input, shape index: {}]   ;;  %s890_s1 = inlined_call_operand.vmem [shape: f32[2,3,128], index: 1, kind: input, shape index: {}]   ;;  %s891_s2 = inlined_call_operand.vmem [shape: f32[4,128], index: 2, kind: input, shape index: {}]   ;;  %s892_s3 = inlined_call_operand.vmem [shape: f32[1,128], index: 3, kind: input, shape index: {}]   ;;  %s893_s4 = inlined_call_operand.hbm [shape: f32[2,8,128], index: 4, kind: output, shape index: {}]  }
   0x1   :  { %11 = vsyncpa [#allocation3 + $0x1], 0 }
   0x2   :  { %12 = vsyncpa [#allocation4], 0 }
   0x3   :  { %14 = vsyncpa [#allocation4 + $0x1], 0  ;;  %s702_s15 = smov 0   ;;  %s704_s16 = smov 0  }
   0x4   :  { %s706_s17 = smov 0   ;;  %s708_s18 = smov 0  }
   0x5   :  { %s710_s19 = smov 0   ;;  %s712_s20 = smov 0  }
   0x6 LB: > { %s482_s21 = sadd.s32 4294967295, %s673_s20   ;;  %s483_s22 = sadd.s32 4294967294, %s673_s20   ;;  %s673_s20 = sphi %s712_s20, %s20_s20   ;;  %s669_s19 = sphi %s710_s19, %s909_s19   ;;  %s665_s18 = sphi %s708_s18, %s908_s18   ;;  %s661_s17 = sphi %s706_s17, %s907_s17   ;;  %s657_s16 = sphi %s704_s16, %s906_s16   ;;  %s653_s15 = sphi %s702_s15, %s905_s15  }
   0x7   : > { %s32_s23 = sadd.s32 1, %s669_s19  ;;  %s41_s24 = sadd.s32 1, %s661_s17 }
   0x8   : > { %p34_p0 = scmp.ge.s32.totalorder %s32_s23, 2  ;;  %p48_p1 = scmp.ne.s32.totalorder %s661_s17, %s657_s16 }
   0x9   : > { %p49_p2 = scmp.eq.s32.totalorder %s673_s20, 0  ;;  %p54_p3 = scmp.ne.s32.totalorder %s657_s16, %s653_s15 }
   0xa   : > { %s911_s23 = smov (%p34_p0, %s32_s23), 0  ;;  %p55_p5 = scmp.eq.s32.totalorder %s482_s21, 0 }
   0xb   : > { %p743_p4 = por %p49_p2, %p48_p1  ;;  %s36_s26 = ssub.s32 %s669_s19, %s911_s23 }
   0xc   : > { %p160_p6 = scmp.eq.s32.totalorder %s482_s21, 1  ;;  %p39_p7 = scmp.eq.s32.totalorder %s36_s26, 0 }
   0xd   : > { %p749_p8 = por %p55_p5, %p54_p3  ;;  %p166_p10 = scmp.eq.s32.totalorder %s483_s22, 1 }
   0xe   : > { %p753_p9 = por %p160_p6, %p48_p1  ;;  %p511_p13 = scmp.lt.s32.totalorder %s673_s20, 2 }
   0xf   : > { %s758_s29 = scalar_select %p39_p7, %s661_s17, %s41_s24  }
  0x10   : > { %s897_s28 = scalar_select %p753_p9, 1, 0 }
  0x11   : > { %p760_p11 = por %p166_p10, %p54_p3  ;;  %s199_s5 = sand.u32 1, %s661_s17  }
  0x12   : > { %s488_s6 = sshll.u32 %s199_s5, 3  ;;  %s489_s7 = sshll.u32 %s669_s19, 7 }
  0x13   : > { %s898_s30 = scalar_select %p760_p11, 1, 0 }
  0x14   : > { %s771_s10 = scalar_lea.hbm %s889_s0, %s489_s7  ;;  %s203_s11 = scalar_lea.vmem [#allocation2], %s488_s6 }
  0x15   : > { %s211_s12 = sshll.u32 %s203_s11, 4  ;;  %p777_p0 = pnand %p511_p13, %p743_p4  ;;  %s773_s12 = int_to_ptr.vmem [resolvable:$true] %s211_s12 }
  0x16   : > { %s200_s14 = scalar_lea.sflag [#allocation3], %s199_s5  ;;  %s561_s21 = scalar_lea.hbm %s771_s10, 128 }
  0x17   : > { %p562_p3 = scmp.ne.s32.totalorder %s771_s10, %s561_s21  ;;  %p563_p5 = pneg %p777_p0 }
  0x18   : > { %s566_s25 = scalar_lea.hbm %s889_s0, 256  ;;  %p567_p4 = scmp.lt.u32.totalorder %s771_s10, %s889_s0 }
  0x19   : > { %p564_p6 = pnand %p563_p5, %p562_p3  ;;  %p568_p10 = scmp.lt.u32.totalorder %s566_s25, %s561_s21 }
  0x1a   : > { %p570_p12 = scmp.lt.u32.totalorder %s561_s21, %s771_s10 }
  0x1b   : > { %p565_p7 = pneg %p564_p6  ;;  %p569_p13 = por %p568_p10, %p567_p4 }
  0x1d   : > { %p571_p1 = por %p570_p12, %p569_p13 }
  0x1f   : > { %p572_p2 = pnand %p571_p1, %p565_p7 }
  0x21   : > { %575 = shalt.err (!%p572_p2)
}
  0x22   : > { %s576_s5 = scalar_lea.vmem %s773_s12, 128  ;;  %s675_s7 = smov [#allocation2]  }
  0x23   : > { %p577_p3 = scmp.ne.s32.totalorder %s773_s12, %s576_s5  ;;  %s581_s8 = sshll.u32 %s675_s7, 4  ;;  %s582_s8 = int_to_ptr.vmem [resolvable:$false] %s581_s8 }
  0x24   : > { %s583_s9 = scalar_lea.vmem %s582_s8, 256  ;;  %p584_p9 = scmp.lt.s32.totalorder %s773_s12, %s582_s8 }
  0x25   : > { %p579_p6 = pnand %p577_p3, %p563_p5  ;;  %p585_p4 = scmp.lt.s32.totalorder %s583_s9, %s576_s5 }
  0x27   : > { %p580_p11 = pneg %p579_p6  ;;  %p586_p10 = por %p585_p4, %p584_p9 }
  0x29   : > { %p587_p12 = pnand %p586_p10, %p580_p11 }
  0x2b   : > { %590 = shalt.err (!%p587_p12)
}
  0x2c   : > { %506 = dma.hbm_to_vmem [thread:$0]  (!%p777_p0), %s771_s10, 128, %s773_s12, %s200_s14  }
  0x2d   : > { %p900_p1 = scmp.lt.s32.totalorder %s673_s20, 3  ;;  %p901_p2 = scmp.ge.s32.totalorder %s673_s20, 1 }
  0x2f   : > { %p227_p5 = pnand %p901_p2, %p900_p1 }
  0x30   : > { %s813_s11 = sand.u32 (!%p227_p5), 1, %s657_s16  }
  0x31   : > { %230 = sbr.rel (%p227_p5) target bundleno = 89 (0x59), region = 36  ;;  %s491_s21 = sshll.u32 (!%p227_p5), %s813_s11, 3 }
  0x32   : > { %s233_s22 = scalar_lea.sflag (!%p227_p5), [#allocation3], %s813_s11  ;;  %s236_s13 = scalar_lea.vmem (!%p227_p5), [#allocation2], %s491_s21 }
  0x38   : > { %644 = dma.done.wait (%p749_p8), %s233_s22, 128  }
  0x39   : > { %646 = vsyncadd (%p749_p8), %s233_s22, 4294967168  ;;  %p275_p9 = scmp.lt.s32.totalorder %s665_s18, 1  ;;  %v293_v0 = vlaneseq  ;;  %v289_v6 = vld [vmem:[%s236_s13] sm:$0xff]  ;;  %vm308_vm0 = vcmask 1042432   ;;  %vm324_vm1 = vcmask 1046528   ;;  %vm338_vm2 = vcmask 1045504  }
  0x3a   : > { %v291_v8 = vld [vmem:[%s891_s2] sm:$0xf]  ;;  %v306_v10 = vrot.slane %v289_v6, 5  ;;  %s274_s7 = scalar_lea.vmem [#allocation5], %s491_s21  ;;  %s496_s9 = sshll.u32 %s665_s18, 7 }
  0x3b   : > { %s276_s10 = scalar_select %p275_p9, %s665_s18, 1  ;;  %v294_v1 = vshrl.u32 %v293_v0, 7  ;;  %v494_v13 = vld [vmem:[%s892_s3] ss:$0 sm:$0xff] }
  0x3c   : > { %s360_s8 = sshll.u32 %s274_s7, 4  ;;  %p902_p11 = scmp.ne.s32.totalorder %s897_s28, 0  ;;  %s837_s8 = int_to_ptr.vmem [resolvable:$true] %s360_s8 }
  0x3d   : > { %s493_s12 = sshll.u32 %s276_s10, 2  ;;  %v295_v2 = vsub.s32 3, %v294_v1  ;;  %v312_v3 = vsub.s32 0, %v294_v1  ;;  %v318_v4 = vsub.s32 1, %v294_v1  ;;  %v332_v5 = vsub.s32 2, %v294_v1  ;;  %s842_s10 = scalar_lea.hbm %s893_s4, %s496_s9 }
  0x3e   : > { %s281_s25 = scalar_lea.vmem %s890_s1, %s493_s12  ;;  %s346_s12 = scalar_lea.sflag [#allocation4], %s813_s11 }
  0x3f   : > { %v290_v7 = vld [vmem:[%s281_s25] sm:$0x7]  ;;  %v296_v9 = vrot.slane %v291_v8, %v295_v2  ;;  %v313_v11 = vrot.slane %v291_v8, %v312_v3  ;;  %v319_v12 = vrot.slane %v291_v8, %v318_v4  ;;  %v333_v14 = vrot.slane %v291_v8, %v332_v5  ;;  %s591_s14 = scalar_lea.vmem %s837_s8, 128  ;;  %s676_s18 = smov [#allocation5]  }
  0x40   : > { %v309_v16 = vsel %vm308_vm0, %v290_v7, %v306_v10  ;;  %p592_p8 = scmp.ne.s32.totalorder %s837_s8, %s591_s14  ;;  %s595_s21 = sshll.u32 %s676_s18, 4  ;;  %s596_s21 = int_to_ptr.vmem [resolvable:$false] %s595_s21 }
  0x41   : > { %v297_v15 = vmul.f32 %v296_v9, %v289_v6  ;;  %v321_v17 = vmul.f32 %v319_v12, %v306_v10  ;;  %v314_v18 = vmul.f32 %v313_v11, %v309_v16  ;;  %v320_v19 = vmul.f32 %v319_v12, %v309_v16  ;;  %s597_s24 = scalar_lea.vmem %s596_s21, 256  ;;  %p598_p13 = scmp.lt.s32.totalorder %s837_s8, %s596_s21 }
  0x42   : > { %v334_v20 = vmul.f32 %v333_v14, %v309_v16  ;;  %v335_v21 = vmul.f32 %v333_v14, %v306_v10  ;;  %p593_p0 = pnand %p592_p8, %p902_p11  ;;  %p599_p3 = scmp.lt.s32.totalorder %s597_s24, %s591_s14 }
  0x43   : > { %v304_v22 = vadd.f32 %v494_v13, %v297_v15  ;;  %v326_v23 = vrot.slane %v321_v17, 1  ;;  %v325_v24 = vrot.slane %v320_v19, 1 }
  0x44   : > { %v339_v25 = vrot.slane %v334_v20, 2  ;;  %v340_v26 = vrot.slane %v335_v21, 2  ;;  %p594_p7 = pneg %p593_p0  ;;  %p600_p6 = por %p599_p3, %p598_p13 }
  0x45   : > { %v315_v27 = vadd.f32 %v314_v18, %v304_v22  ;;  %v327_v28 = vsel %vm324_vm1, %v325_v24, %v326_v23 }
  0x46   : > { %v341_v29 = vsel %vm338_vm2, %v339_v25, %v340_v26  ;;  %p601_p4 = pnand %p600_p6, %p594_p7 }
  0x47   : > { %v329_v30 = vadd.f32 %v327_v28, %v315_v27 }
  0x49   : > { %v343_v31 = vadd.f32 %v341_v29, %v329_v30 }
  0x4b   : > { %344 = vst [vmem:[%s274_s7] sm:$0xff] %v343_v31 }
  0x4c   : > { %604 = shalt.err (!%p601_p4)
}
  0x4d   : > { %s605_s11 = scalar_lea.hbm %s842_s10, 128  ;;  %s609_s27 = scalar_lea.hbm %s893_s4, 256 }
  0x4e   : > { %p606_p10 = scmp.ne.s32.totalorder %s842_s10, %s605_s11  ;;  %p610_p2 = scmp.lt.u32.totalorder %s842_s10, %s893_s4 }
  0x4f   : > { %p611_p5 = scmp.lt.u32.totalorder %s609_s27, %s605_s11  ;;  %p613_p8 = scmp.lt.u32.totalorder %s605_s11, %s842_s10 }
  0x50   : > { %p607_p12 = pnand %p606_p10, %p902_p11 }
  0x51   : > { %p612_p9 = por %p611_p5, %p610_p2 }
  0x52   : > { %p608_p1 = pneg %p607_p12 }
  0x53   : > { %p614_p0 = por %p613_p8, %p612_p9 }
  0x55   : > { %p615_p7 = pnand %p614_p0, %p608_p1 }
  0x57   : > { %618 = shalt.err (!%p615_p7)
}
  0x58   : > { %501 = dma.vmem_to_hbm [thread:$0]  (%p902_p11), %s837_s8, 128, %s842_s10, %s346_s12  }
  0x59 PF: > { %s372_s7 = sand.u32 1, %s653_s15   ;;  %p903_p13 = scmp.ne.s32.totalorder %s898_s30, 0 }
  0x5a   : > { %p904_p3 = scmp.ge.s32.totalorder %s673_s20, 2  ;;  %s373_s9 = scalar_lea.sflag [#allocation4], %s372_s7 }
  0x5c   : > { %p508_p6 = pnand %p904_p3, %p903_p13 }
  0x5e   : > { %648 = dma.done.wait (!%p508_p6), %s373_s9, 128  }
  0x5f   : > { %650 = vsyncadd (!%p508_p6), %s373_s9, 4294967168  ;;  %s20_s20 = sadd.s32 1, %s673_s20   ;;  %s905_s15 = smov %s657_s16 }
  0x60   : > { %p17_p4 = scmp.ge.s32.totalorder %s20_s20, 4   ;;  %s906_s16 = smov %s661_s17 }
  0x61   : > { %s907_s17 = smov %s758_s29  ;;  %s908_s18 = smov %s669_s19 }
  0x62   : > { %s909_s19 = smov %s911_s23  ;;  %19 = sbr.rel (!%p17_p4) target bundleno = 6 (0x6), region = 90 }
  0x69   :  { %378 = vsyncpa [#allocation3], 1 }
  0x6a   :  { %380 = vsyncpa [#allocation3 + $0x1], 1 }
  0x6b   :  { %381 = vsyncpa [#allocation4], 1 }
  0x6c   :  { %383 = vsyncpa [#allocation4 + $0x1], 1 }

</bundles_post_ra>
